<compile_context>
chip_gen: v6e
topology: v6e:2x2x1
jax: 0.10.0
libtpu: 0.0.40
codegen_flags: <defaults>
</compile_context>

<pallas_src>
import functools

import jax
import jax.numpy as jnp
from jax import lax
from jax.experimental import pallas as pl
from jax.experimental.pallas import tpu as pltpu


def _round_up(x, m):
    return (x + m - 1) // m * m


def _pick_tile(dim, max_tile, align):
    if dim >= max_tile:
        return max_tile
    return _round_up(dim, align)


def _linear_kernel_ktiled(x_ref, w_ref, b_ref, o_ref, acc_ref):
    """One (tm, tn) output tile, accumulated over the K grid axis.

    x_ref:   (tm, tk) bf16   activations
    w_ref:   (tn, tk) bf16   nn.Linear weight, native (out, in) layout
    b_ref:   (1,  tn) f32    bias
    o_ref:   (tm, tn) out dtype
    acc_ref: (tm, tn) f32    scratch accumulator
    """
    k = pl.program_id(2)

    # "NT" contraction on the shared lane axis: (tm, tk) x (tn, tk) -> (tm, tn).
    part = lax.dot_general(
        x_ref[...],
        w_ref[...],
        dimension_numbers=(((1,), (1,)), ((), ())),
        preferred_element_type=jnp.float32,
    )

    @pl.when(k == 0)
    def _():
        # Fold the bias into the accumulator init: no zero+RMW on the first step
        # and the epilogue is just a cast+store.
        acc_ref[...] = part + b_ref[...].astype(jnp.float32)

    @pl.when(k > 0)
    def _():
        acc_ref[...] += part

    @pl.when(k == pl.num_programs(2) - 1)
    def _():
        o_ref[...] = acc_ref[...].astype(o_ref.dtype)


def _linear_kernel_fullk(x_ref, w_ref, b_ref, o_ref):
    """Full-K variant (no reduction grid axis, no accumulator scratch)."""
    part = lax.dot_general(
        x_ref[...],
        w_ref[...],
        dimension_numbers=(((1,), (1,)), ((), ())),
        preferred_element_type=jnp.float32,
    )
    o_ref[...] = (part + b_ref[...].astype(jnp.float32)).astype(o_ref.dtype)


def _pallas_linear(x2d, weight, bias, *, compute_dtype=jnp.bfloat16):
    """y = x2d @ weight.T + bias with weight in nn.Linear (N, K) layout."""
    M, K = x2d.shape
    N, K2 = weight.shape
    assert K == K2 and bias.shape == (N,)
    out_dtype = x2d.dtype

    # ---- adaptive, (8,128)-aligned tile selection (VMEM-safe on v5e/v6e/v7x) ----
    tm = _pick_tile(M, 256, 8)
    tn = _pick_tile(N, 512, 128)
    tk = _pick_tile(K, 512, 128)

    # If the whole problem collapses to a single (i, j) tile, split M so both
    # TensorCores of a v7x megacore get work; harmless on v5e/v6e.
    if -(-M // tm) * -(-N // tn) == 1 and tm >= 16 and tm % 16 == 0:
        tm //= 2

    Mp, Np, Kp = _round_up(M, tm), _round_up(N, tn), _round_up(K, tk)
    mg, ng, kg = Mp // tm, Np // tn, Kp // tk

    # bf16 MXU inputs (f32 accumulation inside the kernel); zero-pad to tiles.
    xc = x2d.astype(compute_dtype)
    wc = weight.astype(compute_dtype)
    bc = bias.astype(jnp.float32).reshape(1, N)
    if (Mp, Kp) != (M, K):
        xc = jnp.pad(xc, ((0, Mp - M), (0, Kp - K)))
    if (Np, Kp) != (N, K):
        wc = jnp.pad(wc, ((0, Np - N), (0, Kp - K)))
    if Np != N:
        bc = jnp.pad(bc, ((0, 0), (0, Np - N)))

    cbytes = jnp.dtype(compute_dtype).itemsize
    obytes = jnp.dtype(out_dtype).itemsize
    # 3-deep W buffer + double-buffered x/out + f32 accumulator, plus headroom.
    est_vmem = (3 * tn * tk * cbytes + 2 * tm * tk * cbytes
                + 2 * tm * tn * obytes + 2 * tn * 4 + tm * tn * 4)
    vmem_limit = int(min(max(2 * est_vmem, 16 * 1024 * 1024), 64 * 1024 * 1024))

    cost = pl.CostEstimate(
        flops=2 * Mp * Np * Kp,
        bytes_accessed=cbytes * (Mp * Kp + Np * Kp) + obytes * Mp * Np + 4 * Np,
        transcendentals=0,
    )

    if kg == 1:
        # Whole K fits in one tile: drop the reduction axis entirely.
        y = pl.pallas_call(
            _linear_kernel_fullk,
            out_shape=jax.ShapeDtypeStruct((Mp, Np), out_dtype),
            grid_spec=pltpu.PrefetchScalarGridSpec(
                num_scalar_prefetch=0,
                grid=(mg, ng),
                in_specs=[
                    pl.BlockSpec((tm, Kp), lambda i, j: (i, 0)),   # x tile
                    pl.BlockSpec((tn, Kp), lambda i, j: (j, 0)),   # W tile (native)
                    pl.BlockSpec((1, tn), lambda i, j: (0, j)),    # bias tile
                ],
                out_specs=pl.BlockSpec((tm, tn), lambda i, j: (i, j)),
            ),
            compiler_params=pltpu.CompilerParams(
                dimension_semantics=("parallel", "parallel"),
                vmem_limit_bytes=vmem_limit,
            ),
            cost_estimate=cost,
        )(xc, wc, bc)
    else:
        # K-tiled path: give the (largest) weight transfer a deeper pipeline.
        w_spec = pl.BlockSpec((tn, tk), lambda i, j, k: (j, k),
                              pipeline_mode=pl.Buffered(3))
        y = pl.pallas_call(
            _linear_kernel_ktiled,
            out_shape=jax.ShapeDtypeStruct((Mp, Np), out_dtype),
            grid_spec=pltpu.PrefetchScalarGridSpec(
                num_scalar_prefetch=0,
                grid=(mg, ng, kg),
                in_specs=[
                    pl.BlockSpec((tm, tk), lambda i, j, k: (i, k)),   # x tile
                    w_spec,                                           # W tile (native)
                    pl.BlockSpec((1, tn), lambda i, j, k: (0, j)),    # bias tile
                ],
                out_specs=pl.BlockSpec((tm, tn), lambda i, j, k: (i, j)),
                scratch_shapes=[pltpu.VMEM((tm, tn), jnp.float32)],
            ),
            compiler_params=pltpu.CompilerParams(
                dimension_semantics=("parallel", "parallel", "arbitrary"),
                vmem_limit_bytes=vmem_limit,
            ),
            cost_estimate=cost,
        )(xc, wc, bc)

    if (Mp, Np) != (M, N):
        y = y[:M, :N]
    return y


@functools.partial(jax.jit, static_argnames=("world_size",))
def rtp_linear_forward(x, weight, bias, *, world_size=1):
    """RtpLinearWarpper.forward (qkv_forward path) at world_size == 1.

    x:      (bsz, q_len, in_features)
    weight: (out_features, in_features)   (nn.Linear convention, NOT transposed)
    bias:   (out_features,)
    returns outputs_buffer: (bsz, q_len * world_size, out_features // world_size)
    """
    assert world_size == 1, "single-device semantics only (see header comment)"
    bsz, q_len, d_in = x.shape
    d_out = weight.shape[0]

    y2d = _pallas_linear(x.reshape(bsz * q_len, d_in), weight, bias)

    # outputs_buffer = zeros((bsz, q_len*ws, d_out//ws)); buffer[:, :q_len, :] = y
    # With world_size == 1 the buffer equals y itself.
    return y2d.reshape(bsz, q_len, d_out)


def _check_case(key, bsz, q_len, in_features, out_features):
    kx, kw, kb = jax.random.split(key, 3)
    x = jax.random.normal(kx, (bsz, q_len, in_features), dtype=jnp.float32)
    weight = (
        jax.random.normal(kw, (out_features, in_features), dtype=jnp.float32)
        * (1.0 / jnp.sqrt(in_features))
    )
    bias = jax.random.normal(kb, (out_features,), dtype=jnp.float32) * 0.02

    out = rtp_linear_forward(x, weight, bias, world_size=1)
    out = jax.block_until_ready(out)
    assert out.shape == (bsz, q_len, out_features)

    # Reference with the same bf16 MXU inputs + f32 accumulation (tight tol).
    xb = x.astype(jnp.bfloat16).astype(jnp.float32)
    wb = weight.astype(jnp.bfloat16).astype(jnp.float32)
    ref_bf16 = jnp.einsum("bsk,nk->bsn", xb, wb) + bias
    assert jnp.allclose(out, ref_bf16, atol=2e-3, rtol=2e-3)

    # Sanity vs full-f32 nn.Linear reference (loose tol for bf16 MXU inputs).
    ref_f32 = jnp.einsum("bsk,nk->bsn", x, weight) + bias
    assert jnp.allclose(out, ref_f32, atol=8e-2, rtol=8e-2)


if __name__ == "__main__":
    # Small shapes implied by the module: 3-D sequence input into an nn.Linear.
    key = jax.random.PRNGKey(0)
    k1, k2 = jax.random.split(key, 2)

    # Case 1: aligned shapes, single-tile fast path (no K grid axis).
    _check_case(k1, bsz=2, q_len=64, in_features=256, out_features=256)

    # Case 2: unaligned M/N and K > 512 — exercises padding and the K-tiled
    # accumulator path with the deep weight pipeline.
    _check_case(k2, bsz=1, q_len=24, in_features=640, out_features=384)

    print("KERNEL_OK")
</pallas_src>

<mosaic_0001>
module attributes {stable_mosaic.version = 11 : i64} {
  func.func @_linear_kernel_fullk(%arg0: i32, %arg1: i32, %arg2: memref<64x256xbf16, #tpu.memory_space<vmem>>, %arg3: memref<256x256xbf16, #tpu.memory_space<vmem>>, %arg4: memref<1x256xf32, #tpu.memory_space<vmem>>, %arg5: memref<64x256xf32, #tpu.memory_space<vmem>>) attributes {dimension_semantics = [#tpu.dimension_semantics<parallel>, #tpu.dimension_semantics<parallel>], iteration_bounds = array<i64: 2, 1>, scalar_prefetch = 0 : i64, scratch_operands = 0 : i64, tpu.core_type = #tpu.core_type<tc>, window_params = [{transform_indices = @transform_0, window_bounds = array<i64: 64, 256>}, {transform_indices = @transform_1, window_bounds = array<i64: 256, 256>}, {transform_indices = @transform_2, window_bounds = array<i64: 1, 256>}, {transform_indices = @transform_3, window_bounds = array<i64: 64, 256>}]} {
    %c0 = arith.constant 0 : index
    %c0_0 = arith.constant 0 : index
    %0 = vector.load %arg2[%c0, %c0_0] : memref<64x256xbf16, #tpu.memory_space<vmem>>, vector<64x256xbf16>
    %c0_1 = arith.constant 0 : index
    %c0_2 = arith.constant 0 : index
    %1 = vector.load %arg3[%c0_1, %c0_2] : memref<256x256xbf16, #tpu.memory_space<vmem>>, vector<256x256xbf16>
    %cst = arith.constant dense<0.000000e+00> : vector<64x256xf32>
    %2 = tpu.matmul %0, %1, %cst {dimension_numbers = #tpu.dot_dimension_numbers<[1], [1], [0], [0], [0, 0, 1, 0], [], []>} : vector<64x256xbf16>, vector<256x256xbf16>, vector<64x256xf32> -> vector<64x256xf32>
    %c0_3 = arith.constant 0 : index
    %c0_4 = arith.constant 0 : index
    %3 = vector.load %arg4[%c0_3, %c0_4] : memref<1x256xf32, #tpu.memory_space<vmem>>, vector<1x256xf32>
    %4 = vector.broadcast %3 : vector<1x256xf32> to vector<64x256xf32>
    %5 = arith.addf %2, %4 : vector<64x256xf32>
    %c0_5 = arith.constant 0 : index
    %c0_6 = arith.constant 0 : index
    %6 = vector.load %arg5[%c0_5, %c0_6] : memref<64x256xf32, #tpu.memory_space<vmem>>, vector<64x256xf32>
    tpu.vector_store %arg5[%c0_5, %c0_6], %5 {strides = array<i32>} : memref<64x256xf32, #tpu.memory_space<vmem>>, vector<64x256xf32>,
    return
  }
  func.func @transform_0(%arg0: i32, %arg1: i32) -> (i32, i32) {
    %c0_i32 = arith.constant 0 : i32
    %c0_i32_0 = arith.constant 0 : i32
    return %arg0, %c0_i32 : i32, i32
  }
  func.func @transform_1(%arg0: i32, %arg1: i32) -> (i32, i32) {
    %c0_i32 = arith.constant 0 : i32
    %c0_i32_0 = arith.constant 0 : i32
    return %arg1, %c0_i32 : i32, i32
  }
  func.func @transform_2(%arg0: i32, %arg1: i32) -> (i32, i32) {
    %c0_i32 = arith.constant 0 : i32
    %c0_i32_0 = arith.constant 0 : i32
    return %c0_i32, %arg1 : i32, i32
  }
  func.func @transform_3(%arg0: i32, %arg1: i32) -> (i32, i32) {
    %c0_i32 = arith.constant 0 : i32
    return %arg0, %arg1 : i32, i32
  }
}

</mosaic_0001>

<bundles_post_ra>
// kernel: rtp_linear_forward.1
= control target key start
LH: loop header
LB: loop body
LE: loop exit
PB: predicated region body
PF: predicated region fallthrough
CT: control target
= control target key end

     0   :  { %8 = vsyncpa [#allocation3], 0  ;;  %s1247_s0 = inlined_call_operand.vmem [shape: bf16[128,256], index: 0, kind: input, shape index: {}]   ;;  %s1248_s1 = inlined_call_operand.vmem [shape: bf16[256,256], index: 1, kind: input, shape index: {}]   ;;  %s1249_s2 = inlined_call_operand.vmem [shape: f32[1,256], index: 2, kind: input, shape index: {}]   ;;  %s1250_s3 = inlined_call_operand.hbm [shape: f32[128,256], index: 3, kind: output, shape index: {}]  }
   0x1   :  { %10 = vsyncpa [#allocation3 + $0x1], 0  ;;  %s1002_s12 = smov 0   ;;  %s1004_s13 = smov 0  }
   0x2   :  { %s1006_s14 = smov 0   ;;  %s1008_s15 = smov 0  }
   0x3   :  { %s1010_s16 = smov 0   ;;  %s1012_s17 = smov 0  }
   0x4 LB: > { %s692_s18 = sadd.s32 4294967295, %s977_s17   ;;  %s693_s19 = sadd.s32 4294967294, %s977_s17   ;;  %s977_s17 = sphi %s1012_s17, %s16_s17   ;;  %s973_s16 = sphi %s1010_s16, %s1257_s16   ;;  %s969_s15 = sphi %s1008_s15, %s1256_s15   ;;  %s965_s14 = sphi %s1006_s14, %s1255_s14   ;;  %s961_s13 = sphi %s1004_s13, %s1254_s13   ;;  %s957_s12 = sphi %s1002_s12, %s1253_s12  }
   0x5   : > { %s28_s20 = sadd.s32 1, %s973_s16  ;;  %s115_s21 = sadd.s32 1, %s965_s14 }
   0x6   : > { %p30_p0 = scmp.ge.s32.totalorder %s28_s20, 2  ;;  %p125_p1 = scmp.ne.s32.totalorder %s965_s14, %s961_s13 }
   0x7   : > { %p126_p2 = scmp.eq.s32.totalorder %s692_s18, 1  ;;  %p131_p3 = scmp.ne.s32.totalorder %s961_s13, %s957_s12 }
   0x8   : > { %s1259_s20 = smov (%p30_p0, %s28_s20), 0  ;;  %p132_p5 = scmp.eq.s32.totalorder %s693_s19, 1 }
   0x9   : > { %p1042_p4 = por %p126_p2, %p125_p1  ;;  %s110_s23 = ssub.s32 %s973_s16, %s1259_s20 }
   0xa   : > { %p698_p6 = scmp.ge.s32.totalorder %s977_s17, 1  ;;  %p113_p7 = scmp.eq.s32.totalorder %s110_s23, 0 }
   0xb   : > { %p1049_p8 = por %p132_p5, %p131_p3  ;;  %p178_p9 = scmp.lt.s32.totalorder %s977_s17, 3 }
   0xc   : > { %s1055_s25 = scalar_select %p113_p7, %s965_s14, %s115_s21  }
   0xd   : > { %p179_p10 = pnand %p698_p6, %p178_p9 }
   0xe   : > { %s700_s5 = sshll.u32 (!%p179_p10), %s969_s15, 3  ;;  %s210_s30 = sand.u32 (!%p179_p10), 1, %s961_s13  }
   0xf   : > { %182 = sbr.rel (%p179_p10) target bundleno = 372 (0x174), region = 32  ;;  %p214_p11 = scmp.lt.s32.totalorder (!%p179_p10), %s700_s5, 15 }
  0x10   : > { %s699_s6 = sshll.u32 (!%p179_p10), %s210_s30, 7  ;;  %s751_s7 = sshll.u32 (!%p179_p10), %s969_s15, 11 }
  0x11   : > { %s1192_s11 = scalar_lea.hbm (!%p179_p10), %s1250_s3, %s751_s7  ;;  %s1202_s15 = scalar_lea.sflag (!%p179_p10), [#allocation3], %s210_s30 }
  0x12   : > { %s979_s19 = smov (!%p179_p10), [#allocation2]  }
  0x14   : > { %v841_v0 = vld [vmem:[%s1248_s1 + $0x74] ss:$8 sps:$4 sm:$0xff]   ;;  %v843_v1 = vld [vmem:[%s1248_s1 + $0x70] ss:$8 sps:$4 sm:$0xff]   ;;  %v844_v2 = vld [vmem:[%s1248_s1 + $0x64] ss:$8 sps:$4 sm:$0xff]   ;;  %v276_v40 = vlaneseq }
  0x15   : > { %486 = vmatprep.subr.bf16.mxu0 %v841_v0  ;;  %752 = vmatprep.subr.bf16.mxu1 %v841_v0  ;;  %v846_v3 = vld [vmem:[%s1248_s1 + $0x60] ss:$8 sps:$4 sm:$0xff]   ;;  %v847_v4 = vld [vmem:[%s1248_s1 + $0x54] ss:$8 sps:$4 sm:$0xff]   ;;  %s1261_s5 = smov (!%p214_p11, %s700_s5), 15 }
  0x16   : > { %487 = vmatpush1.bf16.xpose.msra.mxu0 %v843_v1  ;;  %768 = vmatpush1.bf16.xpose.msra.mxu1 %v843_v1  ;;  %v849_v5 = vld [vmem:[%s1248_s1 + $0x50] ss:$8 sps:$4 sm:$0xff]   ;;  %v850_v6 = vld [vmem:[%s1248_s1 + $0x44] ss:$8 sps:$4 sm:$0xff]   ;;  %s749_s21 = sshll.u32 %s1261_s5, 3  ;;  %v277_v41 = vshrl.u32 %v276_v40, 7 }
  0x17   : > { %488 = vmatprep.subr.bf16.mxu0 %v844_v2  ;;  %753 = vmatprep.subr.bf16.mxu1 %v844_v2  ;;  %s1082_s27 = scalar_lea.vmem %s1247_s0, %s749_s21  ;;  %v852_v8 = vld [vmem:[%s1248_s1 + $0x40] ss:$8 sps:$4 sm:$0xff]   ;;  %v853_v10 = vld [vmem:[%s1248_s1 + $0x34] ss:$8 sps:$4 sm:$0xff]   ;;  %v855_v11 = vld [vmem:[%s1248_s1 + $0x30] ss:$8 sps:$4 sm:$0xff]  }
  0x18   : > { %v891_v7 = vld [vmem:[%s1082_s27 + $0x4] ss:$8 sps:$4 sm:$0xff]   ;;  %v858_v13 = vld [vmem:[%s1248_s1 + $0x20] ss:$8 sps:$4 sm:$0xff]   ;;  %v859_v14 = vld [vmem:[%s1248_s1 + $0x14] ss:$8 sps:$4 sm:$0xff]  }
  0x19   : > { %v894_v9 = vld [vmem:[%s1082_s27 + $0x24] ss:$8 sps:$4 sm:$0xff]   ;;  %518 = vmatprep.mubr.bf16.mxu0 %v891_v7  ;;  %v861_v15 = vld [vmem:[%s1248_s1 + $0x10] ss:$8 sps:$4 sm:$0xff]   ;;  %v864_v17 = vld [vmem:[%s1248_s1] ss:$8 sps:$4 sm:$0xff]  }
  0x1a   : > { %538 = vmatprep.mubr.bf16.mxu1 %v894_v9  ;;  %v856_v12 = vld [vmem:[%s1248_s1 + $0x24] ss:$8 sps:$4 sm:$0xff]   ;;  %v865_v18 = vld [vmem:[%s1248_s1 + $0xf4] ss:$8 sps:$4 sm:$0xff]   ;;  %v867_v19 = vld [vmem:[%s1248_s1 + $0xf0] ss:$8 sps:$4 sm:$0xff]  }
  0x1b   : > { %v862_v16 = vld [vmem:[%s1248_s1 + $0x4] ss:$8 sps:$4 sm:$0xff]   ;;  %v870_v21 = vld [vmem:[%s1248_s1 + $0xe0] ss:$8 sps:$4 sm:$0xff]   ;;  %v871_v22 = vld [vmem:[%s1248_s1 + $0xd4] ss:$8 sps:$4 sm:$0xff]  }
  0x1c   : > { %v868_v20 = vld [vmem:[%s1248_s1 + $0xe4] ss:$8 sps:$4 sm:$0xff]   ;;  %v873_v23 = vld [vmem:[%s1248_s1 + $0xd0] ss:$8 sps:$4 sm:$0xff]   ;;  %v876_v25 = vld [vmem:[%s1248_s1 + $0xc0] ss:$8 sps:$4 sm:$0xff]  }
  0x1d   : > { %v874_v24 = vld [vmem:[%s1248_s1 + $0xc4] ss:$8 sps:$4 sm:$0xff]   ;;  %v877_v26 = vld [vmem:[%s1248_s1 + $0xb4] ss:$8 sps:$4 sm:$0xff]   ;;  %v879_v27 = vld [vmem:[%s1248_s1 + $0xb0] ss:$8 sps:$4 sm:$0xff]  }
  0x1e   : > { %489 = vmatpush1.bf16.xpose.msra.mxu0 %v846_v3  ;;  %769 = vmatpush1.bf16.xpose.msra.mxu1 %v846_v3  ;;  %v880_v28 = vld [vmem:[%s1248_s1 + $0xa4] ss:$8 sps:$4 sm:$0xff]   ;;  %v882_v29 = vld [vmem:[%s1248_s1 + $0xa0] ss:$8 sps:$4 sm:$0xff]   ;;  %v883_v30 = vld [vmem:[%s1248_s1 + $0x94] ss:$8 sps:$4 sm:$0xff]  }
  0x1f   : > { %490 = vmatprep.subr.bf16.mxu0 %v847_v4  ;;  %754 = vmatprep.subr.bf16.mxu1 %v847_v4  ;;  %v885_v31 = vld [vmem:[%s1248_s1 + $0x90] ss:$8 sps:$4 sm:$0xff]   ;;  %v886_v32 = vld [vmem:[%s1248_s1 + $0x84] ss:$8 sps:$4 sm:$0xff]   ;;  %v888_v33 = vld [vmem:[%s1248_s1 + $0x80] ss:$8 sps:$4 sm:$0xff]  }
  0x20   : > { %v889_v34 = vld [vmem:[%s1082_s27] ss:$8 sps:$4 sm:$0xff]   ;;  %v895_v36 = vld [vmem:[%s1082_s27 + $0x14] ss:$8 sps:$4 sm:$0xff]   ;;  %v899_v38 = vld [vmem:[%s1082_s27 + $0x10] ss:$8 sps:$4 sm:$0xff]  }
  0x21   : > { %v892_v35 = vld [vmem:[%s1082_s27 + $0x20] ss:$8 sps:$4 sm:$0xff]   ;;  %v897_v37 = vld [vmem:[%s1082_s27 + $0x34] ss:$8 sps:$4 sm:$0xff]   ;;  %v900_v39 = vld [vmem:[%s1082_s27 + $0x30] ss:$8 sps:$4 sm:$0xff]  }
  0x22   : > { %v278_v42 = vsub.s32 0, %v277_v41  ;;  %v274_v43 = vld [vmem:[%s1249_s2] sm:$0x3]  ;;  %v282_v44 = vsub.s32 1, %v277_v41  ;;  %s1173_s27 = scalar_lea.vmem [#allocation2], %s699_s6  ;;  %s905_s21 = sshll.u32 %s979_s19, 4  ;;  %s906_s21 = int_to_ptr.vmem [resolvable:$false] %s905_s21 }
  0x23   : > { %s592_s8 = sshll.u32 %s1173_s27, 4  ;;  %s907_s23 = scalar_lea.vmem %s906_s21, 4096  ;;  %s1194_s8 = int_to_ptr.vmem [resolvable:$true] %s592_s8 }
  0x24   : > { %v279_v45 = vrot.slane %v274_v43, %v278_v42  ;;  %v283_v46 = vrot.slane %v274_v43, %v282_v44  ;;  %s901_s18 = scalar_lea.vmem %s1194_s8, 2048  ;;  %p908_p1 = scmp.lt.s32.totalorder %s1194_s8, %s906_s21 }
  0x25   : > { %p902_p12 = scmp.ne.s32.totalorder %s1194_s8, %s901_s18  ;;  %p909_p2 = scmp.lt.s32.totalorder %s907_s23, %s901_s18 }
  0x26   : > { %491 = vmatpush1.bf16.xpose.msra.mxu0 %v849_v5  ;;  %770 = vmatpush1.bf16.xpose.msra.mxu1 %v849_v5 }
  0x27   : > { %492 = vmatprep.subr.bf16.mxu0 %v850_v6  ;;  %755 = vmatprep.subr.bf16.mxu1 %v850_v6  ;;  %p903_p13 = pnand %p902_p12, %p1042_p4  ;;  %p910_p3 = por %p909_p2, %p908_p1 }
  0x29   : > { %p904_p0 = pneg %p903_p13 }
  0x2b   : > { %p911_p5 = pnand %p910_p3, %p904_p0 }
  0x2e   : > { %493 = vmatpush1.bf16.xpose.msra.mxu0 %v852_v8  ;;  %771 = vmatpush1.bf16.xpose.msra.mxu1 %v852_v8 }
  0x2f   : > { %494 = vmatprep.subr.bf16.mxu0 %v853_v10  ;;  %756 = vmatprep.subr.bf16.mxu1 %v853_v10 }
  0x36   : > { %495 = vmatpush1.bf16.xpose.msra.mxu0 %v855_v11  ;;  %772 = vmatpush1.bf16.xpose.msra.mxu1 %v855_v11 }
  0x37   : > { %496 = vmatprep.subr.bf16.mxu0 %v856_v12  ;;  %757 = vmatprep.subr.bf16.mxu1 %v856_v12 }
  0x3e   : > { %497 = vmatpush1.bf16.xpose.msra.mxu0 %v858_v13  ;;  %773 = vmatpush1.bf16.xpose.msra.mxu1 %v858_v13 }
  0x3f   : > { %498 = vmatprep.subr.bf16.mxu0 %v859_v14  ;;  %758 = vmatprep.subr.bf16.mxu1 %v859_v14 }
  0x46   : > { %499 = vmatpush1.bf16.xpose.msra.mxu0 %v861_v15  ;;  %774 = vmatpush1.bf16.xpose.msra.mxu1 %v861_v15 }
  0x47   : > { %500 = vmatprep.subr.bf16.mxu0 %v862_v16  ;;  %759 = vmatprep.subr.bf16.mxu1 %v862_v16 }
  0x4e   : > { %501 = vmatpush1.bf16.xpose.msra.mxu0 %v864_v17  ;;  %775 = vmatpush1.bf16.xpose.msra.mxu1 %v864_v17 }
  0x4f   : > { %502 = vmatprep.subr.bf16.mxu0 %v865_v18  ;;  %760 = vmatprep.subr.bf16.mxu1 %v865_v18 }
  0x56   : > { %503 = vmatpush2.bf16.xpose.msra.mxu0 %v867_v19  ;;  %776 = vmatpush2.bf16.xpose.msra.mxu1 %v867_v19 }
  0x57   : > { %504 = vmatprep.subr.bf16.mxu0 %v868_v20  ;;  %761 = vmatprep.subr.bf16.mxu1 %v868_v20 }
  0x5e   : > { %505 = vmatpush2.bf16.xpose.msra.mxu0 %v870_v21  ;;  %777 = vmatpush2.bf16.xpose.msra.mxu1 %v870_v21 }
  0x5f   : > { %506 = vmatprep.subr.bf16.mxu0 %v871_v22  ;;  %762 = vmatprep.subr.bf16.mxu1 %v871_v22 }
  0x66   : > { %507 = vmatpush2.bf16.xpose.msra.mxu0 %v873_v23  ;;  %778 = vmatpush2.bf16.xpose.msra.mxu1 %v873_v23 }
  0x67   : > { %508 = vmatprep.subr.bf16.mxu0 %v874_v24  ;;  %763 = vmatprep.subr.bf16.mxu1 %v874_v24 }
  0x6e   : > { %509 = vmatpush2.bf16.xpose.msra.mxu0 %v876_v25  ;;  %779 = vmatpush2.bf16.xpose.msra.mxu1 %v876_v25 }
  0x6f   : > { %510 = vmatprep.subr.bf16.mxu0 %v877_v26  ;;  %764 = vmatprep.subr.bf16.mxu1 %v877_v26 }
  0x76   : > { %511 = vmatpush2.bf16.xpose.msra.mxu0 %v879_v27  ;;  %780 = vmatpush2.bf16.xpose.msra.mxu1 %v879_v27 }
  0x77   : > { %512 = vmatprep.subr.bf16.mxu0 %v880_v28  ;;  %765 = vmatprep.subr.bf16.mxu1 %v880_v28 }
  0x7e   : > { %513 = vmatpush2.bf16.xpose.msra.mxu0 %v882_v29  ;;  %781 = vmatpush2.bf16.xpose.msra.mxu1 %v882_v29 }
  0x7f   : > { %514 = vmatprep.subr.bf16.mxu0 %v883_v30  ;;  %766 = vmatprep.subr.bf16.mxu1 %v883_v30 }
  0x86   : > { %515 = vmatpush2.bf16.xpose.msra.mxu0 %v885_v31  ;;  %782 = vmatpush2.bf16.xpose.msra.mxu1 %v885_v31 }
  0x87   : > { %516 = vmatprep.subr.bf16.mxu0 %v886_v32  ;;  %767 = vmatprep.subr.bf16.mxu1 %v886_v32 }
  0x8e   : > { %517 = vmatpush2.bf16.xpose.msra.mxu0 %v888_v33  ;;  %783 = vmatpush2.bf16.xpose.msra.mxu1 %v888_v33 }
  0x95   : > { %519 = vmatmul.mubr.bf16.vlgmr.msra.gmra.mxu0 %v889_v34  ;;  %539 = vmatmul.mubr.bf16.vlgmr.msra.gmra.mxu1 %v892_v35 }
  0x96   : > { %528 = vmatprep.mubr.bf16.mxu0 %v895_v36  ;;  %548 = vmatprep.mubr.bf16.mxu1 %v897_v37 }
  0x9d   : > { %529 = vmatmul.mubr.bf16.gmra.mxu0 %v899_v38  ;;  %549 = vmatmul.mubr.bf16.gmra.mxu1 %v900_v39 }
 0x155   : > { %v520_v47 = vpop.f32.mrf.mxu0  ;;  %v540_v48 = vpop.f32.mrf.mxu1 }
 0x156   : > { %v521_v49 = vadd.f32 %v520_v47, %v279_v45  ;;  %v541_v50 = vadd.f32 %v540_v48, %v279_v45 }
 0x157   : > { %v522_v51 = vpop.f32.mrf.mxu0  ;;  %v542_v52 = vpop.f32.mrf.mxu1 }
 0x158   : > { %559 = vst [vmem:[%s1173_s27] sm:$0xff] %v521_v49  ;;  %567 = vst [vmem:[%s1173_s27 + $0x40] sm:$0xff] %v541_v50  ;;  %v523_v53 = vadd.f32 %v522_v51, %v283_v46  ;;  %v543_v54 = vadd.f32 %v542_v52, %v283_v46 }
 0x159   : > { %v524_v55 = vpop.f32.mrf.mxu0  ;;  %v544_v56 = vpop.f32.mrf.mxu1 }
 0x15a   : > { %560 = vst [vmem:[%s1173_s27 + $0x8] sm:$0xff] %v523_v53  ;;  %568 = vst [vmem:[%s1173_s27 + $0x48] sm:$0xff] %v543_v54  ;;  %v525_v57 = vadd.f32 %v524_v55, %v279_v45  ;;  %v545_v58 = vadd.f32 %v544_v56, %v279_v45 }
 0x15b   : > { %v526_v59 = vpop.f32.mrf.mxu0  ;;  %v546_v60 = vpop.f32.mrf.mxu1 }
 0x15c   : > { %561 = vst [vmem:[%s1173_s27 + $0x10] sm:$0xff] %v525_v57  ;;  %569 = vst [vmem:[%s1173_s27 + $0x50] sm:$0xff] %v545_v58  ;;  %v527_v61 = vadd.f32 %v526_v59, %v283_v46  ;;  %v547_v62 = vadd.f32 %v546_v60, %v283_v46 }
 0x15d   : > { %v530_v63 = vpop.f32.mrf.mxu0  ;;  %v550_v0 = vpop.f32.mrf.mxu1 }
 0x15e   : > { %562 = vst [vmem:[%s1173_s27 + $0x18] sm:$0xff] %v527_v61  ;;  %570 = vst [vmem:[%s1173_s27 + $0x58] sm:$0xff] %v547_v62  ;;  %v531_v1 = vadd.f32 %v530_v63, %v279_v45  ;;  %v551_v2 = vadd.f32 %v550_v0, %v279_v45 }
 0x15f   : > { %v532_v3 = vpop.f32.mrf.mxu0  ;;  %v552_v4 = vpop.f32.mrf.mxu1 }
 0x160   : > { %563 = vst [vmem:[%s1173_s27 + $0x20] sm:$0xff] %v531_v1  ;;  %571 = vst [vmem:[%s1173_s27 + $0x60] sm:$0xff] %v551_v2  ;;  %v533_v5 = vadd.f32 %v532_v3, %v283_v46  ;;  %v553_v6 = vadd.f32 %v552_v4, %v283_v46 }
 0x161   : > { %v534_v7 = vpop.f32.mrf.mxu0  ;;  %v554_v8 = vpop.f32.mrf.mxu1 }
 0x162   : > { %564 = vst [vmem:[%s1173_s27 + $0x28] sm:$0xff] %v533_v5  ;;  %572 = vst [vmem:[%s1173_s27 + $0x68] sm:$0xff] %v553_v6  ;;  %v535_v9 = vadd.f32 %v534_v7, %v279_v45  ;;  %v555_v10 = vadd.f32 %v554_v8, %v279_v45 }
 0x163   : > { %v536_v11 = vpop.f32.mrf.mxu0  ;;  %v556_v12 = vpop.f32.mrf.mxu1 }
 0x164   : > { %565 = vst [vmem:[%s1173_s27 + $0x30] sm:$0xff] %v535_v9  ;;  %573 = vst [vmem:[%s1173_s27 + $0x70] sm:$0xff] %v555_v10  ;;  %v537_v13 = vadd.f32 %v536_v11, %v283_v46  ;;  %v557_v14 = vadd.f32 %v556_v12, %v283_v46 }
 0x166   : > { %566 = vst [vmem:[%s1173_s27 + $0x38] sm:$0xff] %v537_v13  ;;  %574 = vst [vmem:[%s1173_s27 + $0x78] sm:$0xff] %v557_v14 }
 0x167   : > { %914 = shalt.err (!%p911_p5)
}
 0x168   : > { %s915_s26 = scalar_lea.hbm %s1192_s11, 2048  ;;  %s919_s30 = scalar_lea.hbm %s1250_s3, 4096 }
 0x169   : > { %p916_p6 = scmp.ne.s32.totalorder %s1192_s11, %s915_s26  ;;  %p920_p10 = scmp.lt.s32.totalorder %s1192_s11, %s1250_s3 }
 0x16a   : > { %p921_p11 = scmp.lt.s32.totalorder %s919_s30, %s915_s26 }
 0x16b   : > { %p917_p7 = pnand %p916_p6, %p1042_p4 }
 0x16c   : > { %p922_p12 = por %p921_p11, %p920_p10 }
 0x16d   : > { %p918_p9 = pneg %p917_p7 }
 0x16f   : > { %p923_p13 = pnand %p922_p12, %p918_p9 }
 0x171   : > { %926 = shalt.err (!%p923_p13)
}
 0x172   : > { %s980_s6 = smov 256   ;;  %s981_s27 = smov 16  }
 0x173   : > { %784 = dma.vmem_to_hbm [thread:$0]  (%p1042_p4), %s1194_s8, 2048, %s1192_s11, %s1202_s15, %s980_s6, %s980_s6, %s981_s27  }
 0x174 PF: > { %p790_p0 = scmp.ge.s32.totalorder %s977_s17, 2  ;;  %s607_s7 = sand.u32 1, %s957_s12  }
 0x175   : > { %s608_s9 = scalar_lea.sflag [#allocation3], %s607_s7 }
 0x176   : > { %p787_p1 = pnand %p790_p0, %p1049_p8 }
 0x178   : > { %p788_p2 = pneg %p787_p1 }
 0x17a   : > { %952 = dma.done.wait (%p788_p2), %s608_s9, 2048  }
 0x17b   : > { %954 = vsyncadd (%p788_p2), %s608_s9, 4294965248  ;;  %s16_s17 = sadd.s32 1, %s977_s17   ;;  %s1253_s12 = smov %s961_s13 }
 0x17c   : > { %p13_p3 = scmp.ge.s32.totalorder %s16_s17, 4   ;;  %s1254_s13 = smov %s965_s14 }
 0x17d   : > { %s1255_s14 = smov %s1055_s25  ;;  %s1256_s15 = smov %s973_s16 }
 0x17e   : > { %s1257_s16 = smov %s1259_s20  ;;  %15 = sbr.rel (!%p13_p3) target bundleno = 4 (0x4), region = 73 }
 0x183   :  { %613 = vsyncpa [#allocation3], 1 }
 0x184   :  { %615 = vsyncpa [#allocation3 + $0x1], 1 }

</bundles_post_ra>
